<compile_context>
chip_gen: v6e
topology: v6e:2x2x1
jax: 0.10.0
libtpu: 0.0.40
codegen_flags: <defaults>
</compile_context>

<pallas_src>
import math

import jax
import jax.numpy as jnp
from jax.experimental import pallas as pl
from jax.experimental.pallas import tpu as pltpu


def _round_up(x: int, m: int) -> int:
    return ((x + m - 1) // m) * m


def _siren_kernel(x_ref, w_ref, b_ref, o_ref):
    # x_ref: (tm, K), w_ref: (K, tn), b_ref: (1, tn), o_ref: (tm, tn)
    acc = jnp.dot(x_ref[...], w_ref[...], preferred_element_type=jnp.float32)
    acc = acc + b_ref[...]                       # bias broadcast over rows (VPU)
    o_ref[...] = jnp.sin(acc).astype(o_ref.dtype)  # sin rides the EUP slot


def siren_layer(x, weight, bias, omega_0, *, tm=None, tn=None, matmul_dtype=None):
    """sin(omega_0 * (x @ weight.T + bias)), matching PyTorch SIRENLayer.

    x:      (..., in_features) f32
    weight: (out_features, in_features) f32  (PyTorch nn.Linear layout)
    bias:   (out_features,) f32
    """
    orig_shape = x.shape
    K = orig_shape[-1]
    x2d = x.reshape(-1, K)
    M = x2d.shape[0]
    N, Kw = weight.shape
    assert K == Kw, "weight in_features mismatch"

    out_dtype = x.dtype

    # Fold omega_0 into the tiny weight/bias once:
    #   sin(omega*(x W^T + b)) == sin(x (omega W)^T + (omega b))
    w_t = (weight * omega_0).T          # (K, N): N on the lane axis (MXU-friendly)
    b_row = (bias * omega_0).reshape(1, N)

    if matmul_dtype is not None:
        # Optional narrow MXU / HBM inputs; accumulation stays f32.
        # NOTE: bf16 here will NOT meet the 1e-4 reference tolerance
        # (omega_0 amplifies rounding of x @ W before sin).
        x2d = x2d.astype(matmul_dtype)
        w_t = w_t.astype(matmul_dtype)

    x_bytes = jnp.dtype(x2d.dtype).itemsize
    w_bytes = jnp.dtype(w_t.dtype).itemsize
    o_bytes = jnp.dtype(out_dtype).itemsize

    # ---- tiling policy ---------------------------------------------------
    if tn is None:
        if N % 128 == 0:
            # Lane-aligned: collapse the j axis when it fits, else the
            # largest of {512, 256, 128} that divides N.
            tn = N if N <= 1024 else max(t for t in (512, 256, 128) if N % t == 0)
        else:
            # Block == full array dim is legal; lane-tail stores are masked,
            # which is cheaper than a pad + slice HBM pass over the output.
            tn = N

    if tm is None:
        # ~24 MiB budget for the double-buffered row-dependent tiles
        # (x tile + out tile); leaves headroom for the weight tile inside
        # v7x's 64 MiB VMEM / 32 MiB scoped default.
        budget = 24 << 20
        bytes_per_row = 2 * (K * x_bytes + tn * o_bytes)
        tm = budget // max(bytes_per_row, 1)
        tm = max(8, min(tm, 4096))
        tm = (tm // 8) * 8                               # f32 sublane multiple
        # Keep >= 4 steps on the parallel M axis (v7x: 2 TCs/chip) when there
        # is enough work, without over-sizing tiny batches.
        tm = min(tm, max(8, _round_up(pl.cdiv(M, 4), 8)))

    grid_m = pl.cdiv(M, tm)
    grid_n = pl.cdiv(N, tn)

    # Explicit scoped-VMEM limit (v5e default is only 16 MiB).
    needed = 2 * (tm * K * x_bytes + tm * tn * o_bytes
                  + K * tn * w_bytes + tn * 4)
    vmem_limit = int(max(needed + (4 << 20), 32 << 20))

    cost = pl.CostEstimate(
        flops=2 * M * N * K,
        transcendentals=M * N,
        bytes_accessed=M * K * x_bytes + K * N * w_bytes + N * 4 + M * N * o_bytes,
    )

    # TODO(synk): for a full SIREN MLP, fuse all layers into one kernel so
    # activations stay in VMEM between layers (largest end-to-end win).
    # TODO(synk): add a K ("arbitrary") grid axis + f32 VMEM accumulator if
    # in_features ever grows beyond a few thousand.
    out = pl.pallas_call(
        _siren_kernel,
        out_shape=jax.ShapeDtypeStruct((M, N), out_dtype),
        grid=(grid_m, grid_n),
        in_specs=[
            pl.BlockSpec((tm, K), lambda i, j: (i, 0)),
            pl.BlockSpec((K, tn), lambda i, j: (0, j)),
            pl.BlockSpec((1, tn), lambda i, j: (0, j)),
        ],
        out_specs=pl.BlockSpec((tm, tn), lambda i, j: (i, j)),
        compiler_params=pltpu.CompilerParams(
            dimension_semantics=("parallel", "parallel"),
            vmem_limit_bytes=vmem_limit),
        cost_estimate=cost,
    )(x2d, w_t, b_row)

    return out.reshape(*orig_shape[:-1], N)


if __name__ == "__main__":
    # SIRENLayer(in_features=32, out_features=64, omega_0=30.0)
    in_features = 32
    out_features = 64
    omega_0 = 30.0

    key = jax.random.PRNGKey(0)
    kx, kw, kb = jax.random.split(key, 3)

    # Small, deliberately awkward shapes: M = 2*7 = 14 (not a multiple of 8)
    # and N = 64 (not a multiple of 128) exercise the masked ragged-edge path.
    x = jax.random.normal(kx, (2, 7, in_features), dtype=jnp.float32)

    # SIREN init: weight ~ U(-sqrt(6/in)/omega_0, +sqrt(6/in)/omega_0)
    w_bound = math.sqrt(6.0 / in_features) / omega_0
    weight = jax.random.uniform(
        kw, (out_features, in_features), dtype=jnp.float32,
        minval=-w_bound, maxval=w_bound)
    # Bias keeps nn.Linear default init: U(-1/sqrt(in), +1/sqrt(in))
    b_bound = 1.0 / math.sqrt(in_features)
    bias = jax.random.uniform(
        kb, (out_features,), dtype=jnp.float32,
        minval=-b_bound, maxval=b_bound)

    out = siren_layer(x, weight, bias, omega_0)
    out = jax.block_until_ready(out)

    # Reference in plain JAX (true-f32 matmul so the check is meaningful).
    ref = jnp.sin(omega_0 * (
        jnp.matmul(x, weight.T, precision=jax.lax.Precision.HIGHEST) + bias))

    assert out.shape == (2, 7, out_features)
    assert bool(jnp.isfinite(out).all()), "non-finite values in output"
    assert jnp.allclose(out, ref, atol=1e-4, rtol=1e-4), "mismatch vs reference"

    print("KERNEL_OK")
</pallas_src>

<mosaic_0001>
module attributes {stable_mosaic.version = 11 : i64} {
  func.func @_siren_kernel(%arg0: i32, %arg1: i32, %arg2: memref<8x32xf32, #tpu.memory_space<vmem>>, %arg3: memref<32x64xf32, #tpu.memory_space<vmem>>, %arg4: memref<1x64xf32, #tpu.memory_space<vmem>>, %arg5: memref<8x64xf32, #tpu.memory_space<vmem>>) attributes {dimension_semantics = [#tpu.dimension_semantics<parallel>, #tpu.dimension_semantics<parallel>], iteration_bounds = array<i64: 2, 1>, scalar_prefetch = 0 : i64, scratch_operands = 0 : i64, tpu.core_type = #tpu.core_type<tc>, window_params = [{transform_indices = @transform_0, window_bounds = array<i64: 8, 32>}, {transform_indices = @transform_1, window_bounds = array<i64: 32, 64>}, {transform_indices = @transform_2, window_bounds = array<i64: 1, 64>}, {transform_indices = @transform_3, window_bounds = array<i64: 8, 64>}]} {
    %c0 = arith.constant 0 : index
    %c0_0 = arith.constant 0 : index
    %0 = vector.load %arg2[%c0, %c0_0] : memref<8x32xf32, #tpu.memory_space<vmem>>, vector<8x32xf32>
    %c0_1 = arith.constant 0 : index
    %c0_2 = arith.constant 0 : index
    %1 = vector.load %arg3[%c0_1, %c0_2] : memref<32x64xf32, #tpu.memory_space<vmem>>, vector<32x64xf32>
    %cst = arith.constant dense<0.000000e+00> : vector<8x64xf32>
    %2 = tpu.matmul %0, %1, %cst {dimension_numbers = #tpu.dot_dimension_numbers<[1], [0], [0], [1], [0, 0, 1, 1], [], []>} : vector<8x32xf32>, vector<32x64xf32>, vector<8x64xf32> -> vector<8x64xf32>
    %c0_3 = arith.constant 0 : index
    %c0_4 = arith.constant 0 : index
    %3 = vector.load %arg4[%c0_3, %c0_4] : memref<1x64xf32, #tpu.memory_space<vmem>>, vector<1x64xf32>
    %4 = vector.broadcast %3 : vector<1x64xf32> to vector<8x64xf32>
    %5 = arith.addf %2, %4 : vector<8x64xf32>
    %6 = math.sin %5 : vector<8x64xf32>
    %c0_5 = arith.constant 0 : index
    %c0_6 = arith.constant 0 : index
    %7 = vector.load %arg5[%c0_5, %c0_6] : memref<8x64xf32, #tpu.memory_space<vmem>>, vector<8x64xf32>
    tpu.vector_store %arg5[%c0_5, %c0_6], %6 {strides = array<i32>} : memref<8x64xf32, #tpu.memory_space<vmem>>, vector<8x64xf32>,
    return
  }
  func.func @transform_0(%arg0: i32, %arg1: i32) -> (i32, i32) {
    %c0_i32 = arith.constant 0 : i32
    %c0_i32_0 = arith.constant 0 : i32
    return %arg0, %c0_i32 : i32, i32
  }
  func.func @transform_1(%arg0: i32, %arg1: i32) -> (i32, i32) {
    %c0_i32 = arith.constant 0 : i32
    %c0_i32_0 = arith.constant 0 : i32
    return %c0_i32, %arg1 : i32, i32
  }
  func.func @transform_2(%arg0: i32, %arg1: i32) -> (i32, i32) {
    %c0_i32 = arith.constant 0 : i32
    %c0_i32_0 = arith.constant 0 : i32
    return %c0_i32, %arg1 : i32, i32
  }
  func.func @transform_3(%arg0: i32, %arg1: i32) -> (i32, i32) {
    %c0_i32 = arith.constant 0 : i32
    return %arg0, %arg1 : i32, i32
  }
}

</mosaic_0001>

<bundles_post_ra>
// kernel: tpu_custom_call.1
= control target key start
LH: loop header
LB: loop body
LE: loop exit
PB: predicated region body
PF: predicated region fallthrough
CT: control target
= control target key end

     0   :  { %8 = vsyncpa [#allocation3], 0  ;;  %s1049_s0 = inlined_call_operand.hbm [shape: f32[14,32], index: 0, kind: input, shape index: {}]   ;;  %s1050_s1 = inlined_call_operand.hbm [shape: f32[32,64], index: 1, kind: input, shape index: {}]   ;;  %s1051_s2 = inlined_call_operand.vmem [shape: f32[1,64], index: 2, kind: input, shape index: {}]   ;;  %s1052_s3 = inlined_call_operand.hbm [shape: f32[14,64], index: 3, kind: output, shape index: {}]  }
   0x1   :  { %10 = vsyncpa [#allocation3 + $0x1], 0 }
   0x2   :  { %11 = vsyncpa [#allocation6], 0 }
   0x3   :  { %12 = vsyncpa [#allocation4], 0 }
   0x4   :  { %14 = vsyncpa [#allocation4 + $0x1], 0  ;;  %s848_s12 = smov 0   ;;  %s850_s13 = smov 0  }
   0x5   :  { %s852_s14 = smov 0   ;;  %s854_s15 = smov 0  }
   0x6   :  { %s856_s16 = smov 0   ;;  %s858_s17 = smov 0  }
   0x7 LB: > { %s546_s18 = sadd.s32 4294967295, %s813_s17   ;;  %s547_s19 = sadd.s32 4294967294, %s813_s17   ;;  %s813_s17 = sphi %s858_s17, %s20_s17   ;;  %s809_s16 = sphi %s856_s16, %s1070_s16   ;;  %s805_s15 = sphi %s854_s15, %s1069_s15   ;;  %s801_s14 = sphi %s852_s14, %s1068_s14   ;;  %s797_s13 = sphi %s850_s13, %s1067_s13   ;;  %s793_s12 = sphi %s848_s12, %s1066_s12  }
   0x8   : > { %p52_p0 = scmp.ne.s32.totalorder %s797_s13, %s793_s12  ;;  %p882_p1 = scmp.eq.s32.totalorder %s546_s18, 0 }
   0x9   : > { %p886_p2 = scmp.eq.s32.totalorder %s546_s18, 1  ;;  %p136_p3 = scmp.eq.s32.totalorder %s547_s19, 1 }
   0xa   : > { %p892_p4 = por %p882_p1, %p52_p0  ;;  %p548_p5 = scmp.ge.s32.totalorder %s813_s17, 1 }
   0xb   : > { %p897_p6 = por %p136_p3, %p52_p0  ;;  %p143_p7 = scmp.lt.s32.totalorder %s813_s17, 3 }
   0xc   : > { %s1056_s22 = scalar_select %p892_p4, 1, 0 }
   0xd   : > { %s1057_s23 = scalar_select %p897_p6, 1, 0 }
   0xe   : > { %p902_p8 = pnand %p548_p5, %p143_p7  ;;  %s815_s25 = smov [#allocation5]  }
   0xf   : > { %s157_s26 = sshll.u32 %s815_s25, 4  ;;  %s32_s28 = sadd.s32 1, %s809_s16  ;;  %s158_s26 = int_to_ptr.vmem [resolvable:$true] %s157_s26 }
  0x10   : > { %p596_p9 = pneg %p902_p8  ;;  %s686_s29 = scalar_lea.vmem %s158_s26, 512 }
  0x11   : > { %p687_p13 = scmp.ne.s32.totalorder %s158_s26, %s686_s29  ;;  %p694_p5 = scmp.lt.s32.totalorder %s158_s26, %s158_s26 }
  0x12   : > { %p911_p11 = pnand %p596_p9, %p882_p1  ;;  %p695_p7 = scmp.lt.s32.totalorder %s686_s29, %s686_s29 }
  0x14   : > { %p677_p12 = pneg %p911_p11  ;;  %p696_p6 = por %p695_p7, %p694_p5 }
  0x16   : > { %p689_p0 = pnand %p687_p13, %p677_p12 }
  0x18   : > { %p690_p3 = pneg %p689_p0 }
  0x1a   : > { %p697_p4 = pnand %p696_p6, %p690_p3 }
  0x1c   : > { %700 = shalt.err (!%p697_p4)
}
  0x1d   : > { %s816_s30 = smov 128   ;;  %s817_s4 = smov 8  }
  0x1e   : > { %599 = dma.hbm_to_vmem [thread:$0]  (!%p911_p11), %s1050_s1, 512, %s158_s26, [#allocation6], %s816_s30, %s816_s30, %s817_s4  }
  0x1f   : > { %p34_p6 = scmp.ge.s32.totalorder %s32_s28, 2  ;;  %s39_s7 = sadd.s32 1, %s801_s14 }
  0x20   : > { %p46_p4 = scmp.ne.s32.totalorder %s801_s14, %s797_s13  ;;  %p47_p9 = scmp.eq.s32.totalorder %s813_s17, 0 }
  0x21   : > { %s1072_s28 = smov (%p34_p6, %s32_s28), 0  ;;  %p609_p0 = scmp.lt.s32.totalorder %s813_s17, 2 }
  0x22   : > { %p929_p12 = por %p47_p9, %p46_p4  ;;  %p935_p13 = por %p886_p2, %p46_p4 }
  0x23   : > { %s36_s10 = ssub.s32 %s809_s16, %s1072_s28  ;;  %s177_s11 = sand.u32 1, %s801_s14  }
  0x24   : > { %p37_p11 = scmp.eq.s32.totalorder %s36_s10, 0  ;;  %s552_s18 = sshll.u32 %s177_s11, 3 }
  0x25   : > { %s553_s25 = sshll.u32 %s809_s16, 7  ;;  %s181_s30 = scalar_lea.vmem [#allocation2], %s552_s18 }
  0x26   : > { %s944_s19 = scalar_select %p37_p11, %s801_s14, %s39_s7  }
  0x27   : > { %s186_s29 = scalar_lea.hbm %s1049_s0, %s553_s25  ;;  %s188_s4 = sshll.u32 %s181_s30, 4  ;;  %s189_s4 = int_to_ptr.vmem [resolvable:$true] %s188_s4 }
  0x28   : > { %p952_p2 = pnand %p609_p0, %p929_p12  ;;  %s178_s5 = scalar_lea.sflag [#allocation3], %s177_s11 }
  0x29   : > { %s714_s6 = scalar_lea.vmem %s189_s4, 128  ;;  %s818_s7 = smov [#allocation2]  }
  0x2a   : > { %p703_p3 = pneg %p952_p2  ;;  %p715_p5 = scmp.ne.s32.totalorder %s189_s4, %s714_s6 }
  0x2b   : > { %s719_s10 = sshll.u32 %s818_s7, 4  ;;  %s720_s10 = int_to_ptr.vmem [resolvable:$false] %s719_s10 }
  0x2c   : > { %p717_p7 = pnand %p715_p5, %p703_p3  ;;  %s721_s25 = scalar_lea.vmem %s720_s10, 256 }
  0x2d   : > { %p722_p4 = scmp.lt.s32.totalorder %s189_s4, %s720_s10  ;;  %p723_p9 = scmp.lt.s32.totalorder %s721_s25, %s714_s6 }
  0x2e   : > { %p718_p6 = pneg %p717_p7 }
  0x2f   : > { %p724_p11 = por %p723_p9, %p722_p4 }
  0x31   : > { %p725_p10 = pnand %p724_p11, %p718_p6 }
  0x33   : > { %728 = shalt.err (!%p725_p10)
}
  0x34   : > { %603 = dma.hbm_to_vmem [thread:$0]  (!%p952_p2), %s186_s29, 128, %s189_s4, %s178_s5  }
  0x35   : > { %197 = sbr.rel (%p902_p8) target bundleno = 360 (0x168), region = 32  ;;  %s963_s8 = sand.u32 (!%p902_p8), 1, %s797_s13  }
  0x36   : > { %s555_s11 = sshll.u32 (!%p902_p8), %s963_s8, 3  ;;  %s200_s18 = scalar_lea.sflag (!%p902_p8), [#allocation3], %s963_s8 }
  0x37   : > { %s203_s26 = scalar_lea.vmem (!%p902_p8), [#allocation2], %s555_s11  ;;  %p1063_p12 = scmp.ne.s32.totalorder (!%p902_p8), %s1056_s22, 0 }
  0x3a   : > { %780 = dma.done.wait (%p1063_p12), %s200_s18, 128  }
  0x3b   : > { %782 = vsyncadd (%p1063_p12), %s200_s18, 4294967168 }
  0x3c   : > { %784 = dma.done.wait (%p882_p1), [#allocation6], 512  }
  0x3d   : > { %786 = vsyncadd (%p882_p1), [#allocation6], 4294966784  ;;  %v819_v0 = vmov 0.0   ;;  %vm820_vm0 = vmmov 0   ;;  %v240_v1 = vld [vmem:[#allocation5 + $0x18] sm:$0xff]  ;;  %v239_v2 = vld [vmem:[#allocation5 + $0x10] sm:$0xff] }
  0x3e   : > { %573 = vmatprep.subr.mxu0 %v819_v0  ;;  %581 = vmatprep.mubr.msk.f32.mxu0 %vm820_vm0, %v819_v0  ;;  %v238_v3 = vld [vmem:[#allocation5 + $0x8] sm:$0xff]  ;;  %v237_v4 = vld [vmem:[#allocation5] sm:$0xff]  ;;  %v236_v5 = vld [vmem:[%s203_s26] sm:$0xff]  ;;  %vm248_vm1 = vcmask 261120   ;;  %v821_v20 = vmov 683565275  }
  0x3f   : > { %574 = vmatpush3.msra.mxu0 %v240_v1  ;;  %v558_v6 = vld [vmem:[%s1051_s2] ss:$0 sm:$0xff]  ;;  %v822_v22 = vmov 2475754826   ;;  %v823_v25 = vmov 2131351028  }
  0x40   : > { %575 = vmatprep.subr.mxu0 %v819_v0  ;;  %v824_v28 = vmov 2102212464   ;;  %v825_v31 = vmov 920167782   ;;  %v826_v34 = vmov 1326507024  }
  0x41   : > { %576 = vmatpush3.msra.mxu0 %v239_v2  ;;  %s565_s24 = sshll.u32 %s805_s15, 7  ;;  %s232_s27 = scalar_lea.vmem [#allocation7], %s555_s11  ;;  %vm426_vm14 = vcmask 523264  }
  0x42   : > { %577 = vmatprep.subr.mxu0 %v819_v0  ;;  %s443_s29 = sshll.u32 %s232_s27, 4  ;;  %s1007_s21 = scalar_lea.hbm %s1052_s3, %s565_s24  ;;  %s444_s29 = int_to_ptr.vmem [resolvable:$true] %s443_s29 }
  0x43   : > { %578 = vmatpush3.msra.mxu0 %v238_v3  ;;  %s429_s15 = scalar_lea.sflag [#allocation4], %s963_s8  ;;  %s729_s5 = scalar_lea.vmem %s444_s29, 128 }
  0x44   : > { %579 = vmatprep.subr.mxu0 %v819_v0  ;;  %p730_p1 = scmp.ne.s32.totalorder %s444_s29, %s729_s5  ;;  %s827_s6 = smov [#allocation7]  }
  0x45   : > { %580 = vmatpush3.msra.mxu0 %v237_v4  ;;  %s733_s7 = sshll.u32 %s827_s6, 4  ;;  %s734_s7 = int_to_ptr.vmem [resolvable:$false] %s733_s7 }
  0x46   : > { %582 = vmatmul.mubr.msk.f32.vlgmr.msra.gmra.mxu0 %vm248_vm1, %v236_v5  ;;  %p731_p8 = pnand %p730_p1, %p935_p13  ;;  %s735_s10 = scalar_lea.vmem %s734_s7, 256 }
  0x47   : > { %p736_p0 = scmp.lt.s32.totalorder %s444_s29, %s734_s7  ;;  %p737_p2 = scmp.lt.s32.totalorder %s735_s10, %s729_s5 }
  0x48   : > { %p732_p10 = pneg %p731_p8 }
  0x49   : > { %p738_p3 = por %p737_p2, %p736_p0 }
  0x4b   : > { %p739_p5 = pnand %p738_p3, %p732_p10 }
 0x106   : > { %v318_v7 = vpop.f32.mrf.mxu0 }
 0x107   : > { %v980_v8 = vadd.f32 %v558_v6, %v318_v7 }
 0x108   : > { %v583_v9 = vpop.f32.mrf.mxu0 }
 0x109   : > { %v325_v10 = vand.u32 2139095040, %v980_v8  ;;  %v322_v14 = vand.u32 2147483647, %v980_v8  ;;  %vm324_vm9 = vcmp.lt.s32.totalorder %v980_v8, 0  ;;  %vm414_vm15 = vweird.f32 %v980_v8 }
 0x10b   : > { %v326_v11 = vshrl.u32 %v325_v10, 23  ;;  %v329_v17 = vand.u32 8388607, %v322_v14  ;;  %vm323_vm10 = vcmp.le.f32.partialorder %v322_v14, 0.7853982 }
 0x10d   : > { %v560_v12 = vadd.s32 4294967169, %v326_v11  ;;  %v330_v36 = vor.u32 8388608, %v329_v17 }
 0x10f   : > { %v332_v13 = vadd.s32 1, %v560_v12  ;;  %v370_v50 = vshll.u32 %v330_v36, 8 }
 0x111   : > { %vm333_vm2 = vcmp.gt.s32.totalorder %v332_v13, 0 }
 0x112   : > { %v334_v15 = vsel %vm333_vm2, %v332_v13, 0 }
 0x113   : > { %v336_v16 = vand.u32 31, %v334_v15  ;;  %v335_v19 = vshrl.u32 %v334_v15, 5 }
 0x115   : > { %v337_v18 = vsub.s32 32, %v336_v16  ;;  %v339_v21 = vshll.u32 %v821_v20, %v336_v16  ;;  %v342_v23 = vshll.u32 %v822_v22, %v336_v16  ;;  %v345_v27 = vshll.u32 %v823_v25, %v336_v16 }
 0x116   : > { %v348_v30 = vshll.u32 %v824_v28, %v336_v16  ;;  %v351_v33 = vshll.u32 %v825_v31, %v336_v16  ;;  %vm354_vm3 = vcmp.lt.s32.totalorder %v335_v19, 1  ;;  %vm357_vm4 = vcmp.lt.s32.totalorder %v335_v19, 4 }
 0x117   : > { %v340_v24 = vshrl.u32 %v822_v22, %v337_v18  ;;  %v343_v26 = vshrl.u32 %v823_v25, %v337_v18  ;;  %v346_v29 = vshrl.u32 %v824_v28, %v337_v18  ;;  %v349_v32 = vshrl.u32 %v825_v31, %v337_v18 }
 0x118   : > { %v352_v35 = vshrl.u32 %v826_v34, %v337_v18  ;;  %v338_v45 = vshrl.u32 %v821_v20, %v337_v18  ;;  %vm356_vm5 = vcmp.lt.s32.totalorder %v335_v19, 3  ;;  %vm355_vm6 = vcmp.lt.s32.totalorder %v335_v19, 2 }
 0x119   : > { %v341_v37 = vor.u32 %v340_v24, %v339_v21  ;;  %v344_v38 = vor.u32 %v343_v26, %v342_v23  ;;  %v347_v39 = vor.u32 %v346_v29, %v345_v27  ;;  %v350_v40 = vor.u32 %v349_v32, %v348_v30 }
 0x11a   : > { %v353_v41 = vor.u32 %v352_v35, %v351_v33 }
 0x11b   : > { %v359_v42 = vsel %vm357_vm4, %v347_v39, 2102212464  ;;  %v362_v43 = vsel %vm354_vm3, %v341_v37, %v344_v38  ;;  %v366_v44 = vsel %vm354_vm3, %v344_v38, %v347_v39  ;;  %v363_v46 = vsel %vm357_vm4, %v350_v40, 920167782 }
 0x11c   : > { %v367_v47 = vsel %vm357_vm4, %v353_v41, 1326507024  ;;  %v364_v48 = vsel %vm356_vm5, %v347_v39, %v363_v46  ;;  %v358_v51 = vsel %vm354_vm3, %v338_v45, %v341_v37  ;;  %v360_v52 = vsel %vm356_vm5, %v344_v38, %v359_v42 }
 0x11d   : > { %v368_v49 = vsel %vm356_vm5, %v350_v40, %v367_v47  ;;  %v365_v53 = vsel %vm355_vm6, %v362_v43, %v364_v48  ;;  %v361_v59 = vsel %vm355_vm6, %v358_v51, %v360_v52 }
 0x11e   : > { %v369_v54 = vsel %vm355_vm6, %v366_v44, %v368_v49  ;;  %v989_v57 = vmul.u32.u64.low %v370_v50, %v365_v53  ;;  %v990_v58 = vmul.u32.u64.high %v370_v50, %v365_v53, %v989_v57  ;;  %v377_v61 = vmul.u32 %v370_v50, %v361_v59 }
 0x11f   : > { %v986_v55 = vmul.u32.u64.low %v370_v50, %v369_v54  ;;  %v987_v56 = vmul.u32.u64.high %v370_v50, %v369_v54, %v986_v55 }
 0x120   : > { %v380_v60 = vadd.s32 1, %v990_v58 }
 0x121   : > { %vm379_vm7 = vc.u32 %v987_v56, %v989_v57  ;;  %v378_v10 = vadd.s32 %v989_v57, %v987_v56 }
 0x122   : > { %v381_v62 = vsel %vm379_vm7, %v380_v60, %v990_v58 }
 0x123   : > { %v382_v63 = vadd.s32 %v381_v62, %v377_v61 }
 0x125   : > { %v383_v0 = vadd.s32 536870912, %v382_v63 }
 0x127   : > { %v384_v1 = vshrl.u32 %v383_v0, 30 }
 0x129   : > { %v385_v2 = vshll.u32 %v384_v1, 30  ;;  %v408_v24 = vsub.s32 4, %v384_v1 }
 0x12b   : > { %v386_v3 = vsub.s32 %v382_v63, %v385_v2  ;;  %v409_v27 = vsel %vm324_vm9, %v408_v24, %v384_v1 }
 0x12c   : > { %v411_v28 = vsel %vm323_vm10, 0, %v409_v27 }
 0x12d   : > { %v388_v4 = vsub.s32 0, %v386_v3  ;;  %v415_v29 = vadd.s32 3, %v411_v28 }
 0x12f   : > { %v561_v5 = vmin.u32 %v388_v4, %v386_v3  ;;  %v416_v30 = vand.u32 3, %v415_v29 }
 0x131   : > { %v390_v6 = vclz %v561_v5  ;;  %vm421_vm11 = vcmp.eq.s32.totalorder %v416_v30, 2  ;;  %vm418_vm12 = vcmp.eq.s32.totalorder %v416_v30, 0  ;;  %vm417_vm13 = vcmp.lt.s32.totalorder %v416_v30, 2 }
 0x133   : > { %v562_v7 = vadd.s32 4294967294, %v390_v6 }
 0x135   : > { %vm563_vm8 = vcmp.lt.s32.totalorder %v562_v7, 0 }
 0x136   : > { %v393_v9 = vsel %vm563_vm8, 0, %v562_v7 }
 0x137   : > { %v394_v11 = vsub.s32 32, %v393_v9  ;;  %v398_v12 = vsub.s32 4294967266, %v393_v9  ;;  %v395_v13 = vshll.u32 %v386_v3, %v393_v9 }
 0x139   : > { %v396_v15 = vshrl.u32 %v378_v10, %v394_v11  ;;  %v399_v16 = vadd.s32 127, %v398_v12 }
 0x13b   : > { %v397_v17 = vor.u32 %v396_v15, %v395_v13  ;;  %v400_v18 = vshll.u32 %v399_v16, 23 }
 0x13d   : > { %v401_v19 = vor.u32 4788187, %v400_v18  ;;  %v404_v21 = vcvt.s32.f32 %v397_v17 }
 0x13f   : > { %v402_v20 = vand.u32 2147483647, %v401_v19 }
 0x141   : > { %v405_v22 = vmul.f32 %v404_v21, %v402_v20 }
 0x143   : > { %v406_v23 = vxor.u32 2147483648, %v405_v22 }
 0x145   : > { %v407_v25 = vsel %vm324_vm9, %v406_v23, %v405_v22 }
 0x146   : > { %v410_v26 = vsel %vm323_vm10, %v980_v8, %v407_v25 }
 0x147   : > { %671 = vcosq.f32 %v410_v26 }
 0x148   : > { %673 = vsinq.f32 %v410_v26 }
 0x154   : > { %v672_v31 = vpop.eup %671 }
 0x155   : > { %v674_v32 = vpop.eup %673  ;;  %v422_v33 = vxor.u32 2147483648, %v672_v31 }
 0x156   : > { %v419_v34 = vxor.u32 2147483648, %v674_v32 }
 0x157   : > { %v423_v14 = vsel %vm421_vm11, %v422_v33, %v674_v32 }
 0x158   : > { %v420_v35 = vsel %vm418_vm12, %v672_v31, %v419_v34 }
 0x159   : > { %v424_v36 = vsel %vm417_vm13, %v420_v35, %v423_v14 }
 0x15a   : > { %v425_v37 = vsel %vm414_vm15, nan, %v424_v36 }
 0x15b   : > { %427 = vst.msk [vmem:[%s232_s27] sm:$0xff] %vm426_vm14, %v425_v37 }
 0x15c   : > { %742 = shalt.err (!%p739_p5)
}
 0x15d   : > { %s743_s25 = scalar_lea.hbm %s1007_s21, 128  ;;  %s747_s18 = scalar_lea.hbm %s1052_s3, 256 }
 0x15e   : > { %p744_p7 = scmp.ne.s32.totalorder %s1007_s21, %s743_s25  ;;  %p748_p9 = scmp.lt.s32.totalorder %s1007_s21, %s1052_s3 }
 0x15f   : > { %p749_p11 = scmp.lt.s32.totalorder %s747_s18, %s743_s25 }
 0x160   : > { %p745_p6 = pnand %p744_p7, %p935_p13 }
 0x161   : > { %p750_p12 = por %p749_p11, %p748_p9 }
 0x162   : > { %p746_p4 = pneg %p745_p6 }
 0x164   : > { %p751_p1 = pnand %p750_p12, %p746_p4 }
 0x166   : > { %754 = shalt.err (!%p751_p1)
}
 0x167   : > { %594 = dma.vmem_to_hbm [thread:$0]  (%p935_p13), %s444_s29, 128, %s1007_s21, %s429_s15  }
 0x168 PF: > { %s455_s22 = sand.u32 1, %s793_s12   ;;  %p1064_p8 = scmp.ne.s32.totalorder %s1057_s23, 0 }
 0x169   : > { %p1065_p10 = scmp.ge.s32.totalorder %s813_s17, 2  ;;  %s456_s24 = scalar_lea.sflag [#allocation4], %s455_s22 }
 0x16b   : > { %p605_p0 = pnand %p1065_p10, %p1064_p8 }
 0x16d   : > { %p606_p2 = pneg %p605_p0 }
 0x16f   : > { %788 = dma.done.wait (%p606_p2), %s456_s24, 128  }
 0x170   : > { %790 = vsyncadd (%p606_p2), %s456_s24, 4294967168  ;;  %s20_s17 = sadd.s32 1, %s813_s17   ;;  %s1066_s12 = smov %s797_s13 }
 0x171   : > { %p17_p3 = scmp.ge.s32.totalorder %s20_s17, 4   ;;  %s1067_s13 = smov %s801_s14 }
 0x172   : > { %s1068_s14 = smov %s944_s19  ;;  %s1069_s15 = smov %s809_s16 }
 0x173   : > { %s1070_s16 = smov %s1072_s28  ;;  %19 = sbr.rel (!%p17_p3) target bundleno = 7 (0x7), region = 85 }
 0x178   :  { %461 = vsyncpa [#allocation3], 1 }
 0x179   :  { %463 = vsyncpa [#allocation3 + $0x1], 1 }
 0x17a   :  { %464 = vsyncpa [#allocation6], 1 }
 0x17b   :  { %465 = vsyncpa [#allocation4], 1 }
 0x17c   :  { %467 = vsyncpa [#allocation4 + $0x1], 1 }

</bundles_post_ra>
